<compile_context>
chip_gen: v7x
topology: tpu7x:2x2x1
jax: 0.10.0
libtpu: 0.0.40
codegen_flags: <defaults>
</compile_context>

<pallas_src>
import jax
import jax.numpy as jnp
from jax.experimental import pallas as pl
from jax.experimental.pallas import tpu as pltpu


def _round_up(n, m):
    return ((n + m - 1) // m) * m


def _vmem_padded_bytes(shape, dtype):
    """Bytes a 2-D VMEM buffer actually occupies (sublane x 128-lane rounding)."""
    itemsize = jnp.dtype(dtype).itemsize
    sublane = {4: 8, 2: 16, 1: 32}.get(itemsize, 8)
    rows, cols = (1, shape[0]) if len(shape) == 1 else (shape[-2], shape[-1])
    return _round_up(rows, sublane) * _round_up(cols, 128) * itemsize


def _mlp_kernel(x_ref,
                w0_ref, b0_ref,
                w1_ref, b1_ref,
                wo_ref, bo_ref,
                o_ref):
    """Fused MLP forward on one batch tile: 2x (Linear+ReLU), Linear+Sigmoid."""
    # x stays f32 in HBM/VMEM; cast to bf16 on the VPU only for the MXU.
    x = x_ref[...].astype(jnp.bfloat16)

    # hidden layer 0: Linear -> ReLU -> Dropout(eval = identity)
    h = jnp.dot(x, w0_ref[...].astype(jnp.bfloat16),
                preferred_element_type=jnp.float32) + b0_ref[...]
    h = jnp.maximum(h, 0.0)

    # hidden layer 1: Linear -> ReLU -> Dropout(eval = identity)
    h = jnp.dot(h.astype(jnp.bfloat16), w1_ref[...].astype(jnp.bfloat16),
                preferred_element_type=jnp.float32) + b1_ref[...]
    h = jnp.maximum(h, 0.0)

    # output layer: Linear -> Sigmoid (numerically stable, exact reciprocal)
    z = jnp.dot(h.astype(jnp.bfloat16), wo_ref[...].astype(jnp.bfloat16),
                preferred_element_type=jnp.float32) + bo_ref[...]
    neg = z < 0.0
    ez = jnp.exp(jnp.where(neg, z, -z))      # exp of a non-positive value
    inv = 1.0 / (1.0 + ez)
    o_ref[...] = jnp.where(neg, ez * inv, inv)


def sequential_model_forward(x, params, *, block_batch=2048):
    """x: [B, input_dim] float32. params: list of (w[in,out], b[1,out]) f32."""
    (w0, b0), (w1, b1), (wo, bo) = params
    B, in_dim = x.shape
    out_dim = wo.shape[1]

    # --- batch tiling -------------------------------------------------------
    # Pick the tile to minimize padding, and keep >= 2 grid steps when the
    # batch is big enough so a v7x megacore can split the "parallel" axis.
    n_tiles = max(1, -(-B // block_batch))          # ceil div
    if B >= 16:
        n_tiles = max(n_tiles, 2)
    tb = _round_up(-(-B // n_tiles), 8)
    Bp = _round_up(B, tb)
    if Bp != B:
        x = jnp.pad(x, ((0, Bp - B), (0, 0)))
    grid = (Bp // tb,)

    # --- honest VMEM budget (padded layout sizes, double-buffered) ----------
    f32 = jnp.float32
    vmem_bytes = (
        2 * _vmem_padded_bytes((tb, in_dim), f32)      # x tile
        + 2 * _vmem_padded_bytes((tb, out_dim), f32)   # out tile
        + 2 * sum(_vmem_padded_bytes(a.shape, f32)
                  for a in (w0, b0, w1, b1, wo, bo))   # resident params (2 bufs)
        + (1 << 20)                                    # headroom
    )
    vmem_bytes = int(max(4 << 20, min(vmem_bytes, 32 << 20)))

    # Weights/biases resident in VMEM across all grid steps (constant index map).
    def const_spec(shape):
        return pl.BlockSpec(shape, lambda i: (0, 0))

    out = pl.pallas_call(
        _mlp_kernel,
        out_shape=jax.ShapeDtypeStruct((Bp, out_dim), jnp.float32),
        grid=grid,
        in_specs=[
            pl.BlockSpec((tb, in_dim), lambda i: (i, 0)),
            const_spec(w0.shape), const_spec(b0.shape),
            const_spec(w1.shape), const_spec(b1.shape),
            const_spec(wo.shape), const_spec(bo.shape),
        ],
        out_specs=pl.BlockSpec((tb, out_dim), lambda i: (i, 0)),
        compiler_params=pltpu.CompilerParams(
            dimension_semantics=("parallel",),
            vmem_limit_bytes=vmem_bytes),
    )(x, w0, b0, w1, b1, wo, bo)

    return out[:B] if Bp != B else out


def init_linear_params(key, in_dim, out_dim):
    """Deterministic init mimicking nn.Linear default (U(-1/sqrt(fan_in), +))."""
    kw, kb = jax.random.split(key)
    bound = 1.0 / jnp.sqrt(jnp.float32(in_dim))
    # stored already transposed to [in, out] for x @ W
    w = jax.random.uniform(kw, (in_dim, out_dim), jnp.float32, -bound, bound)
    b = jax.random.uniform(kb, (1, out_dim), jnp.float32, -bound, bound)
    return w, b


def _ref_forward(x, params):
    """Pure-JAX f32 reference (dropout = identity in eval)."""
    (w0, b0), (w1, b1), (wo, bo) = params
    h = jnp.maximum(x @ w0 + b0, 0.0)
    h = jnp.maximum(h @ w1 + b1, 0.0)
    return jax.nn.sigmoid(h @ wo + bo)


if __name__ == "__main__":
    # Module config: SequentialModelCPU(input_dim=16, output_dim=8,
    #                                   hidden_states=[32, 32], dropout_p=0.25)
    input_dim = 16
    output_dim = 8
    hidden_states = [32, 32]
    batch = 8

    root = jax.random.PRNGKey(0)
    k_x, k0, k1, k2 = jax.random.split(root, 4)

    x = jax.random.normal(k_x, (batch, input_dim), jnp.float32)

    params = [
        init_linear_params(k0, input_dim, hidden_states[0]),
        init_linear_params(k1, hidden_states[0], hidden_states[1]),
        init_linear_params(k2, hidden_states[1], output_dim),
    ]

    fwd = jax.jit(sequential_model_forward)
    out = jax.block_until_ready(fwd(x, params))

    ref = _ref_forward(x, params)

    assert out.shape == (batch, output_dim)
    assert bool(jnp.all(out > 0.0)) and bool(jnp.all(out < 1.0))
    assert bool(jnp.allclose(out, ref, atol=2e-2, rtol=2e-2))

    print("KERNEL_OK")
</pallas_src>

<mosaic_0001>
module attributes {stable_mosaic.version = 11 : i64} {
  func.func @_mlp_kernel(%arg0: i32, %arg1: memref<8x16xf32, #tpu.memory_space<vmem>>, %arg2: memref<16x32xf32, #tpu.memory_space<vmem>>, %arg3: memref<1x32xf32, #tpu.memory_space<vmem>>, %arg4: memref<32x32xf32, #tpu.memory_space<vmem>>, %arg5: memref<1x32xf32, #tpu.memory_space<vmem>>, %arg6: memref<32x8xf32, #tpu.memory_space<vmem>>, %arg7: memref<1x8xf32, #tpu.memory_space<vmem>>, %arg8: memref<8x8xf32, #tpu.memory_space<vmem>>) attributes {dimension_semantics = [#tpu.dimension_semantics<parallel>], iteration_bounds = array<i64: 1>, scalar_prefetch = 0 : i64, scratch_operands = 0 : i64, tpu.core_type = #tpu.core_type<tc>, window_params = [{transform_indices = @transform_0, window_bounds = array<i64: 8, 16>}, {pipeline_mode = #tpu.pipeline_mode<synchronous>, transform_indices = @transform_1, window_bounds = array<i64: 16, 32>}, {pipeline_mode = #tpu.pipeline_mode<synchronous>, transform_indices = @transform_2, window_bounds = array<i64: 1, 32>}, {pipeline_mode = #tpu.pipeline_mode<synchronous>, transform_indices = @transform_3, window_bounds = array<i64: 32, 32>}, {pipeline_mode = #tpu.pipeline_mode<synchronous>, transform_indices = @transform_4, window_bounds = array<i64: 1, 32>}, {pipeline_mode = #tpu.pipeline_mode<synchronous>, transform_indices = @transform_5, window_bounds = array<i64: 32, 8>}, {pipeline_mode = #tpu.pipeline_mode<synchronous>, transform_indices = @transform_6, window_bounds = array<i64: 1, 8>}, {transform_indices = @transform_7, window_bounds = array<i64: 8, 8>}]} {
    %c0 = arith.constant 0 : index
    %c0_0 = arith.constant 0 : index
    %0 = vector.load %arg1[%c0, %c0_0] : memref<8x16xf32, #tpu.memory_space<vmem>>, vector<8x16xf32>
    %1 = arith.truncf %0 : vector<8x16xf32> to vector<8x16xbf16>
    %c0_1 = arith.constant 0 : index
    %c0_2 = arith.constant 0 : index
    %2 = vector.load %arg2[%c0_1, %c0_2] : memref<16x32xf32, #tpu.memory_space<vmem>>, vector<16x32xf32>
    %3 = arith.truncf %2 : vector<16x32xf32> to vector<16x32xbf16>
    %cst = arith.constant dense<0.000000e+00> : vector<8x32xf32>
    %4 = tpu.matmul %1, %3, %cst {dimension_numbers = #tpu.dot_dimension_numbers<[1], [0], [0], [1], [0, 0, 1, 1], [], []>} : vector<8x16xbf16>, vector<16x32xbf16>, vector<8x32xf32> -> vector<8x32xf32>
    %c0_3 = arith.constant 0 : index
    %c0_4 = arith.constant 0 : index
    %5 = vector.load %arg3[%c0_3, %c0_4] : memref<1x32xf32, #tpu.memory_space<vmem>>, vector<1x32xf32>
    %6 = vector.broadcast %5 : vector<1x32xf32> to vector<8x32xf32>
    %7 = arith.addf %4, %6 : vector<8x32xf32>
    %cst_5 = arith.constant 0.000000e+00 : f32
    %8 = vector.broadcast %cst_5 : f32 to vector<8x32xf32>
    %9 = arith.maximumf %7, %8 : vector<8x32xf32>
    %10 = arith.truncf %9 : vector<8x32xf32> to vector<8x32xbf16>
    %c0_6 = arith.constant 0 : index
    %c0_7 = arith.constant 0 : index
    %11 = vector.load %arg4[%c0_6, %c0_7] : memref<32x32xf32, #tpu.memory_space<vmem>>, vector<32x32xf32>
    %12 = arith.truncf %11 : vector<32x32xf32> to vector<32x32xbf16>
    %cst_8 = arith.constant dense<0.000000e+00> : vector<8x32xf32>
    %13 = tpu.matmul %10, %12, %cst_8 {dimension_numbers = #tpu.dot_dimension_numbers<[1], [0], [0], [1], [0, 0, 1, 1], [], []>} : vector<8x32xbf16>, vector<32x32xbf16>, vector<8x32xf32> -> vector<8x32xf32>
    %c0_9 = arith.constant 0 : index
    %c0_10 = arith.constant 0 : index
    %14 = vector.load %arg5[%c0_9, %c0_10] : memref<1x32xf32, #tpu.memory_space<vmem>>, vector<1x32xf32>
    %15 = vector.broadcast %14 : vector<1x32xf32> to vector<8x32xf32>
    %16 = arith.addf %13, %15 : vector<8x32xf32>
    %cst_11 = arith.constant 0.000000e+00 : f32
    %17 = vector.broadcast %cst_11 : f32 to vector<8x32xf32>
    %18 = arith.maximumf %16, %17 : vector<8x32xf32>
    %19 = arith.truncf %18 : vector<8x32xf32> to vector<8x32xbf16>
    %c0_12 = arith.constant 0 : index
    %c0_13 = arith.constant 0 : index
    %20 = vector.load %arg6[%c0_12, %c0_13] : memref<32x8xf32, #tpu.memory_space<vmem>>, vector<32x8xf32>
    %21 = arith.truncf %20 : vector<32x8xf32> to vector<32x8xbf16>
    %cst_14 = arith.constant dense<0.000000e+00> : vector<8x8xf32>
    %22 = tpu.matmul %19, %21, %cst_14 {dimension_numbers = #tpu.dot_dimension_numbers<[1], [0], [0], [1], [0, 0, 1, 1], [], []>} : vector<8x32xbf16>, vector<32x8xbf16>, vector<8x8xf32> -> vector<8x8xf32>
    %c0_15 = arith.constant 0 : index
    %c0_16 = arith.constant 0 : index
    %23 = vector.load %arg7[%c0_15, %c0_16] : memref<1x8xf32, #tpu.memory_space<vmem>>, vector<1x8xf32>
    %24 = vector.broadcast %23 : vector<1x8xf32> to vector<8x8xf32>
    %25 = arith.addf %22, %24 : vector<8x8xf32>
    %cst_17 = arith.constant 0.000000e+00 : f32
    %26 = vector.broadcast %cst_17 : f32 to vector<8x8xf32>
    %27 = arith.cmpf olt, %25, %26 : vector<8x8xf32>
    %cst_18 = arith.constant 0.000000e+00 : f32
    %28 = vector.broadcast %cst_18 : f32 to vector<8x8xf32>
    %29 = arith.subf %28, %25 : vector<8x8xf32>
    %30 = arith.select %27, %25, %29 : vector<8x8xi1>, vector<8x8xf32>
    %31 = math.exp %30 : vector<8x8xf32>
    %cst_19 = arith.constant 1.000000e+00 : f32
    %32 = vector.broadcast %cst_19 : f32 to vector<8x8xf32>
    %33 = arith.addf %32, %31 : vector<8x8xf32>
    %cst_20 = arith.constant 1.000000e+00 : f32
    %34 = vector.broadcast %cst_20 : f32 to vector<8x8xf32>
    %35 = arith.divf %34, %33 : vector<8x8xf32>
    %36 = arith.mulf %31, %35 : vector<8x8xf32>
    %37 = arith.select %27, %36, %35 : vector<8x8xi1>, vector<8x8xf32>
    %c0_21 = arith.constant 0 : index
    %c0_22 = arith.constant 0 : index
    %38 = vector.load %arg8[%c0_21, %c0_22] : memref<8x8xf32, #tpu.memory_space<vmem>>, vector<8x8xf32>
    tpu.vector_store %arg8[%c0_21, %c0_22], %37 {strides = array<i32>} : memref<8x8xf32, #tpu.memory_space<vmem>>, vector<8x8xf32>,
    return
  }
  func.func @transform_0(%arg0: i32) -> (i32, i32) {
    %c0_i32 = arith.constant 0 : i32
    %c0_i32_0 = arith.constant 0 : i32
    return %arg0, %c0_i32 : i32, i32
  }
  func.func @transform_1(%arg0: i32) -> (i32, i32) {
    %c0_i32 = arith.constant 0 : i32
    %c0_i32_0 = arith.constant 0 : i32
    %c0_i32_1 = arith.constant 0 : i32
    return %c0_i32, %c0_i32_0 : i32, i32
  }
  func.func @transform_2(%arg0: i32) -> (i32, i32) {
    %c0_i32 = arith.constant 0 : i32
    %c0_i32_0 = arith.constant 0 : i32
    %c0_i32_1 = arith.constant 0 : i32
    return %c0_i32, %c0_i32_0 : i32, i32
  }
  func.func @transform_3(%arg0: i32) -> (i32, i32) {
    %c0_i32 = arith.constant 0 : i32
    %c0_i32_0 = arith.constant 0 : i32
    %c0_i32_1 = arith.constant 0 : i32
    return %c0_i32, %c0_i32_0 : i32, i32
  }
  func.func @transform_4(%arg0: i32) -> (i32, i32) {
    %c0_i32 = arith.constant 0 : i32
    %c0_i32_0 = arith.constant 0 : i32
    %c0_i32_1 = arith.constant 0 : i32
    return %c0_i32, %c0_i32_0 : i32, i32
  }
  func.func @transform_5(%arg0: i32) -> (i32, i32) {
    %c0_i32 = arith.constant 0 : i32
    %c0_i32_0 = arith.constant 0 : i32
    %c0_i32_1 = arith.constant 0 : i32
    return %c0_i32, %c0_i32_0 : i32, i32
  }
  func.func @transform_6(%arg0: i32) -> (i32, i32) {
    %c0_i32 = arith.constant 0 : i32
    %c0_i32_0 = arith.constant 0 : i32
    %c0_i32_1 = arith.constant 0 : i32
    return %c0_i32, %c0_i32_0 : i32, i32
  }
  func.func @transform_7(%arg0: i32) -> (i32, i32) {
    %c0_i32 = arith.constant 0 : i32
    %c0_i32_0 = arith.constant 0 : i32
    return %arg0, %c0_i32 : i32, i32
  }
}

</mosaic_0001>

<bundles_post_ra>
// kernel: sequential_model_forward.1
= control target key start
LH: loop header
LB: loop body
LE: loop exit
PB: predicated region body
PF: predicated region fallthrough
CT: control target
= control target key end

     0   :  { %12 = vsyncpa [#allocation3], 0  ;;  %s439_s0 = inlined_call_operand.hbm [shape: f32[8,16], index: 0, kind: input, shape index: {}]   ;;  %s440_s1 = inlined_call_operand.vmem [shape: f32[16,32], index: 1, kind: input, shape index: {}]   ;;  %s441_s2 = inlined_call_operand.vmem [shape: f32[1,32], index: 2, kind: input, shape index: {}]   ;;  %s442_s3 = inlined_call_operand.vmem [shape: f32[32,32], index: 3, kind: input, shape index: {}]   ;;  %s443_s4 = inlined_call_operand.vmem [shape: f32[1,32], index: 4, kind: input, shape index: {}]   ;;  %s444_s5 = inlined_call_operand.vmem [shape: f32[32,8], index: 5, kind: input, shape index: {}]   ;;  %s445_s6 = inlined_call_operand.vmem [shape: f32[1,8], index: 6, kind: input, shape index: {}]   ;;  %s446_s7 = inlined_call_operand.hbm [shape: f32[8,8], index: 7, kind: output, shape index: {}]  }
   0x1   :  { %13 = vsyncpa [#allocation4], 0  ;;  %s332_s24 = smov [#allocation2]   ;;  %s284_s28 = scalar_lea.hbm %s439_s0, 128 }
   0x2   :  { %s20_s25 = sshll.u32 %s332_s24, 4  ;;  %p285_p0 = scmp.ne.s32.totalorder %s439_s0, %s284_s28  ;;  %s21_s25 = int_to_ptr.vmem [resolvable:$true] %s20_s25 }
   0x3   :  { %p288_p1 = scmp.lt.u32.totalorder %s284_s28, %s439_s0 }
   0x5   :  { %p290_p2 = pnand %p288_p1, %p285_p0 }
   0x7   :  { %293 = shalt.err (!%p290_p2)
}
   0x8   :  { %s294_s10 = scalar_lea.vmem %s21_s25, 128  ;;  %p299_p4 = scmp.lt.s32.totalorder %s21_s25, %s21_s25 }
   0x9   :  { %p295_p3 = scmp.ne.s32.totalorder %s21_s25, %s294_s10  ;;  %p300_p5 = scmp.lt.s32.totalorder %s294_s10, %s294_s10 }
   0xb   :  { %p301_p6 = por %p300_p5, %p299_p4 }
   0xd   :  { %p302_p7 = pnand %p301_p6, %p295_p3 }
   0xf   :  { %305 = shalt.err (!%p302_p7)
}
  0x10   :  { %23 = dma.hbm_to_vmem [thread:$0]  %s439_s0, 128, %s21_s25, [#allocation3]  }
  0x11   :  { %328 = dma.done.wait [#allocation3], 128  }
  0x12   :  { %329 = vsyncadd [#allocation3], 4294967168  ;;  %v333_v0 = vmov 0.0   ;;  %vm334_vm0 = vmmov 0   ;;  %v42_v1 = vld [vmem:[%s440_s1] sm:$0xff]  ;;  %v43_v2 = vld [vmem:[%s440_s1 + $0x8] sm:$0xff] }
  0x13   :  { %254 = vmatprep.subr.bf16.mxu0 %v333_v0  ;;  %256 = vmatprep.mubr.msk.bf16.mxu0 %vm334_vm0, %v333_v0  ;;  %v40_v3 = vld [vmem:[#allocation2] sm:$0xff]  ;;  %v44_v4 = vpack.c.bf16 %v43_v2, %v42_v1  ;;  %vm52_vm1 = vcmask 130048   ;;  %v99_v7 = vld [vmem:[%s442_s3 + $0x8] sm:$0xff]  ;;  %v100_v9 = vld [vmem:[%s442_s3 + $0x10] sm:$0xff]  ;;  %vm111_vm2 = vcmask 261120   ;;  %vm223_vm4 = vcmask 64512  }
  0x14   :  { %260 = vmatprep.subr.bf16.mxu1 %v333_v0  ;;  %264 = vmatprep.mubr.msk.bf16.mxu1 %vm334_vm0, %v333_v0  ;;  %v41_v5 = vpack.c.bf16 %v40_v3, %v40_v3  ;;  %v98_v6 = vld [vmem:[%s442_s3] sm:$0xff]  ;;  %v101_v10 = vld [vmem:[%s442_s3 + $0x18] sm:$0xff]  ;;  %v158_v13 = vld [vmem:[%s444_s5 + $0x8] sm:$0xff] }
  0x15   :  { %255 = vmatpush3.bf16.msra.mxu0 %v44_v4  ;;  %v102_v8 = vpack.c.bf16 %v99_v7, %v98_v6  ;;  %v103_v11 = vpack.c.bf16 %v101_v10, %v100_v9  ;;  %v157_v12 = vld [vmem:[%s444_s5] sm:$0xff]  ;;  %v159_v23 = vld [vmem:[%s444_s5 + $0x10] sm:$0xff]  ;;  %v160_v24 = vld [vmem:[%s444_s5 + $0x18] sm:$0xff] }
  0x16   :  { %268 = vmatprep.subr.bf16.mxu0 %v333_v0  ;;  %v161_v14 = vpack.c.bf16 %v158_v13, %v157_v12  ;;  %v240_v15 = vld [vmem:[%s441_s2] ss:$0 sm:$0xff]  ;;  %v162_v25 = vpack.c.bf16 %v160_v24, %v159_v23 }
  0x17   :  { %261 = vmatpush3.bf16.msra.mxu1 %v102_v8  ;;  %v242_v26 = vld [vmem:[%s443_s4] ss:$0 sm:$0xff]  ;;  %s335_s4 = smov [#allocation5]  }
  0x18   :  { %257 = vmatmul.mubr.msk.bf16.vlgmr.msra.gmra.mrb[0].mxu0 %vm52_vm1, %v41_v5  ;;  %262 = vmatprep.subr.bf16.mxu1 %v333_v0  ;;  %v244_v34 = vld [vmem:[%s445_s6] ss:$0 sm:$0xff]  ;;  %s231_s5 = sshll.u32 %s335_s4, 4  ;;  %s232_s5 = int_to_ptr.vmem [resolvable:$true] %s231_s5 }
  0x19   :  { %272 = vmatprep.mubr.msk.bf16.mxu0 %vm334_vm0, %v333_v0  ;;  %269 = vmatpush3.bf16.msra.mxu0 %v161_v14  ;;  %s306_s6 = scalar_lea.vmem %s232_s5, 128  ;;  %p311_p9 = scmp.lt.s32.totalorder %s232_s5, %s232_s5 }
  0x1a   :  { %270 = vmatprep.subr.bf16.mxu0 %v333_v0  ;;  %p307_p8 = scmp.ne.s32.totalorder %s232_s5, %s306_s6  ;;  %p312_p10 = scmp.lt.s32.totalorder %s306_s6, %s306_s6 }
  0x1b   :  { %263 = vmatpush3.bf16.msra.mxu1 %v103_v11 }
  0x1c   :  { %p313_p11 = por %p312_p10, %p311_p9 }
  0x1d   :  { %271 = vmatpush3.bf16.msra.mxu0 %v162_v25 }
  0x1e   :  { %p314_p12 = pnand %p313_p11, %p307_p8 }
  0xeb   :  { %v90_v16 = vpop.f32.mrb[0].mxu0 }
  0xec   :  { %v91_v17 = vadd.f32 %v240_v15, %v90_v16  ;;  %v258_v18 = vpop.f32.mrb[1].mxu0 }
  0xed   :  { %v93_v19 = vpop.f32.mrb[2].mxu0 }
  0xee   :  { %v96_v20 = vmax.f32 %v91_v17, 0.0  ;;  %v259_v21 = vpop.f32.mrb[3].mxu0 }
  0xf0   :  { %v97_v22 = vpack.c.bf16 %v96_v20, %v96_v20 }
  0xf2   :  { %265 = vmatmul.mubr.msk.bf16.vlgmr.msra.gmra.mrb[0].mxu1 %vm111_vm2, %v97_v22 }
 0x1c5   :  { %v149_v27 = vpop.f32.mrb[0].mxu1 }
 0x1c6   :  { %v150_v28 = vadd.f32 %v242_v26, %v149_v27  ;;  %v266_v29 = vpop.f32.mrb[1].mxu1 }
 0x1c7   :  { %v152_v30 = vpop.f32.mrb[2].mxu1 }
 0x1c8   :  { %v155_v31 = vmax.f32 %v150_v28, 0.0  ;;  %v267_v32 = vpop.f32.mrb[3].mxu1 }
 0x1ca   :  { %v156_v33 = vpack.c.bf16 %v155_v31, %v155_v31 }
 0x1cc   :  { %273 = vmatmul.mubr.msk.bf16.vlgmr.msra.gmra.mrb[4].mxu0 %vm111_vm2, %v156_v33 }
 0x29f   :  { %v207_v35 = vpop.f32.mrb[4].mxu0 }
 0x2a0   :  { %v208_v36 = vadd.f32 %v244_v34, %v207_v35  ;;  %v274_v37 = vpop.f32.mrb[5].mxu0 }
 0x2a1   :  { %v210_v38 = vpop.f32.mrb[6].mxu0 }
 0x2a2   :  { %vm213_vm3 = vcmp.lt.f32.partialorder %v208_v36, 0.0  ;;  %v214_v39 = vsub.f32 0.0, %v208_v36  ;;  %v275_v40 = vpop.f32.mrb[7].mxu0 }
 0x2a4   :  { %v215_v41 = vsel %vm213_vm3, %v208_v36, %v214_v39 }
 0x2a5   :  { %v216_v42 = vmul.f32 1.442695, %v215_v41 }
 0x2a7   :  { %280 = vpow2.f32 %v216_v42 }
 0x2b1   :  { %v281_v43 = vpop.eup %280 }
 0x2b2   :  { %v218_v44 = vadd.f32 1.0, %v281_v43 }
 0x2b4   :  { %282 = vrcp.f32 %v218_v44 }
 0x2be   :  { %v283_v45 = vpop.eup %282 }
 0x2bf   :  { %v221_v46 = vmul.f32 %v283_v45, %v281_v43 }
 0x2c1   :  { %v222_v47 = vsel %vm213_vm3, %v221_v46, %v283_v45 }
 0x2c2   :  { %224 = vst.msk [vmem:[#allocation5] sm:$0xff] %vm223_vm4, %v222_v47 }
 0x2c3   :  { %317 = shalt.err (!%p314_p12)
}
 0x2c4   :  { %s318_s14 = scalar_lea.hbm %s446_s7, 128 }
 0x2c5   :  { %p319_p13 = scmp.ne.s32.totalorder %s446_s7, %s318_s14  ;;  %p322_p0 = scmp.lt.u32.totalorder %s318_s14, %s446_s7 }
 0x2c7   :  { %p324_p1 = pnand %p322_p0, %p319_p13 }
 0x2c9   :  { %327 = shalt.err (!%p324_p1)
}
 0x2ca   :  { %234 = dma.vmem_to_hbm [thread:$0]  %s232_s5, 128, %s446_s7, [#allocation4]  }
 0x2cb   :  { %330 = dma.done.wait [#allocation4], 128  }
 0x2cc   :  { %331 = vsyncadd [#allocation4], 4294967168 }
 0x2cd   :  { %238 = vsyncpa [#allocation3], 1 }
 0x2ce   :  { %239 = vsyncpa [#allocation4], 1 }

</bundles_post_ra>
